<compile_context>
chip_gen: v7x
topology: tpu7x:2x2x1
jax: 0.10.0
libtpu: 0.0.40
codegen_flags: <defaults>
</compile_context>

<pallas_src>
import functools

import numpy as np
import jax
import jax.numpy as jnp
from jax.experimental import pallas as pl
from jax.experimental.pallas import tpu as pltpu

MAX_LEN = 600  # same as the PyTorch module


def position_encoding_init(n_position, emb_dim):
    """Sinusoid position encoding table (matches the PyTorch reference exactly)."""
    position_enc = np.array(
        [[pos / np.power(10000, 2 * (j // 2) / emb_dim) for j in range(emb_dim)]
         if pos != 0 else np.zeros(emb_dim)
         for pos in range(n_position)])
    position_enc[1:, 0::2] = np.sin(position_enc[1:, 0::2])
    position_enc[1:, 1::2] = np.cos(position_enc[1:, 1::2])
    return jnp.asarray(position_enc, dtype=jnp.float32)


# ----------------------------- Pallas kernels -----------------------------

def _mask_pos_kernel(x_ref, tri_ref, mask_ref, pos_ref, *, max_pos):
    """Padding mask + 1-based positions of non-pad tokens.

    x_ref:    (B, S) int32
    tri_ref:  (S, S) bf16 precomputed upper-triangular ones (tri[k,t]=1 iff k<=t)
    mask_ref: (B, S) float32 -> 1.0 where x != 0 else 0.0
    pos_ref:  (B, S) int32   -> running position of non-pad tokens, 0 at pads
    """
    x = x_ref[...]
    nz = x != 0
    mask_ref[...] = nz.astype(jnp.float32)
    # Inclusive prefix-sum along the sequence axis as an upper-triangular matmul.
    # 0/1 bf16 inputs with f32 accumulation -> exact, MXU-native rate.
    cum = jnp.dot(nz.astype(jnp.bfloat16), tri_ref[...],
                  preferred_element_type=jnp.float32)            # (B, S)
    pos = jnp.where(nz, cum.astype(jnp.int32), 0)
    # Clamp so >max_pos non-pad tokens can never index the pos table OOB.
    pos_ref[...] = jnp.minimum(pos, max_pos)


def _gather_add_kernel(wid_ref, pid_ref, emb_hbm, pos_ref, out_ref,
                       wbuf, sems, *, seq_tile, nbuf, batch, seq_len,
                       only_position):
    """DMA-gather word embedding rows from HBM, read position rows from the
    VMEM-resident table, add, and write directly in (seq, batch, D) layout.

    wid_ref/pid_ref : SMEM (B*S,) int32 scalar-prefetched word / position ids
    emb_hbm         : HBM  (V, D_pad) f32 word embedding table (memory_space=ANY)
    pos_ref         : VMEM (P, D_pad) f32 sinusoid position table (resident)
    out_ref         : VMEM (TS, B, D_pad) f32 output block
    wbuf            : VMEM (NBUF, B, D_pad) f32 deep pipeline buffers
    sems            : DMA semaphores, shape (NBUF, B)
    """
    s0 = pl.program_id(0) * seq_tile

    def pos_rows(s):
        # Gather B rows from the VMEM-resident position table (no DMA).
        rows = []
        for b in range(batch):                                   # static unroll
            p = pid_ref[b * seq_len + s]
            rows.append(pos_ref[pl.ds(p, 1), :])                 # (1, D_pad)
        return rows[0] if batch == 1 else jnp.concatenate(rows, axis=0)

    if only_position:
        @pl.loop(0, seq_tile)
        def _(ls):
            out_ref[ls] = pos_rows(s0 + ls)
        return

    def issue_row(s, slot):
        # slot is a static Python int; s may be dynamic.
        for b in range(batch):                                   # static unroll
            w = wid_ref[b * seq_len + s]                         # pre-clamped in wrapper
            pltpu.make_async_copy(emb_hbm.at[pl.ds(w, 1)],
                                  wbuf.at[slot, pl.ds(b, 1)],
                                  sems.at[slot, b]).start()

    def wait_row(slot):
        for b in range(batch):
            # Dummy (1, D_pad) source slice: only the copy's shape matters for
            # wait(); keep it in sync with issue_row's shape.
            pltpu.make_async_copy(emb_hbm.at[pl.ds(0, 1)],
                                  wbuf.at[slot, pl.ds(b, 1)],
                                  sems.at[slot, b]).wait()

    # Prime the full pipeline depth: NBUF rows (NBUF*B descriptors) in flight.
    for r in range(nbuf):                                        # static
        issue_row(s0 + r, r)

    n_groups = seq_tile // nbuf                                  # static

    @pl.loop(0, n_groups)
    def _(g):
        base = g * nbuf
        for j in range(nbuf):            # static unroll -> static slot index j
            ls = base + j
            prow = pos_rows(s0 + ls)     # SMEM/VMEM reads before the DMA wait
            wait_row(j)
            out_ref[ls] = wbuf[j] + prow
            # Refill this slot with the row NBUF ahead (keeps NBUF-1 in flight).
            @pl.when(ls + nbuf < seq_tile)
            def _():
                issue_row(s0 + ls + nbuf, j)


# ------------------------------- wrapper -----------------------------------

def _round_up(x, m):
    return (x + m - 1) // m * m


def _vmem_capacity_bytes():
    try:
        return int(pltpu.get_tpu_info().vmem_capacity_bytes)
    except Exception:
        return 64 << 20          # conservative default (v7x per-TC physical)


def _choose_tiling(S, B, D_pad, n_pos):
    """Seq-tile / pipeline-depth / VMEM-limit sized per TPU generation."""
    vmem_cap = _vmem_capacity_bytes()
    budget = min(vmem_cap // 2, 48 << 20)                 # leave headroom
    fixed = n_pos * D_pad * 4 + 8 * B * D_pad * 4 + (2 << 20)   # pos table + wbuf + slack
    per_row = 2 * B * D_pad * 4                           # double-buffered output rows
    max_ts = max(1, (budget - fixed) // per_row)
    # Keep the grid >= 2 tiles so the "parallel" axis can shard across v7x's 2 TCs.
    ts_cap = min(max_ts, max(1, S // 2))
    # TODO(synk): non-divisor S needs a cdiv grid + ragged-tail guard; assume S % TS == 0.
    ts = 1
    for cand in range(1, S + 1):
        if S % cand == 0 and cand <= ts_cap:
            ts = cand
    nbuf = 1
    for n in (8, 7, 6, 5, 4, 3, 2, 1):
        if ts % n == 0:
            nbuf = n
            break
    vmem_need = n_pos * D_pad * 4 + nbuf * B * D_pad * 4 + 2 * ts * B * D_pad * 4
    vmem_limit = int(min(vmem_cap, max(32 << 20, vmem_need + (8 << 20))))
    return ts, nbuf, vmem_limit


def prepare_embedding_tables(emb_weight, pos_weight):
    """Pad tables ONCE to a lane-dense width (call at init, not per forward)."""
    D = emb_weight.shape[1]
    D_pad = _round_up(D, 128)
    emb_w = emb_weight.astype(jnp.float32)
    pos_w = pos_weight.astype(jnp.float32)
    if D_pad != D:
        emb_w = jnp.pad(emb_w, ((0, 0), (0, D_pad - D)))
        pos_w = jnp.pad(pos_w, ((0, 0), (0, D_pad - D)))
    return emb_w, pos_w, D


def glove_embedding_with_position(x, emb_w_pad, pos_w_pad, emb_dim,
                                  only_position=False):
    x = x.astype(jnp.int32)
    B, S = x.shape
    V, D_pad = emb_w_pad.shape
    P = pos_w_pad.shape[0]

    # ---------- Kernel 1: mask + absolute positions (tiny, grid-less) ----------
    tri = jnp.triu(jnp.ones((S, S), dtype=jnp.bfloat16))      # tri[k,t]=1 iff k<=t
    vmem = pl.BlockSpec(memory_space=pltpu.MemorySpace.VMEM)
    mask, word_pos = pl.pallas_call(
        functools.partial(_mask_pos_kernel, max_pos=P - 1),
        out_shape=(jax.ShapeDtypeStruct((B, S), jnp.float32),
                   jax.ShapeDtypeStruct((B, S), jnp.int32)),
        in_specs=[vmem, vmem],
        out_specs=(vmem, vmem),
    )(x, tri)

    TS, NBUF, vmem_limit = _choose_tiling(S, B, D_pad, P)

    # Clamp word ids once, vectorized (HBM DMA sources must stay in bounds);
    # position ids are already clamped to [0, P-1] by kernel 1.
    wid = jnp.clip(x, 0, V - 1).reshape(-1)
    pid = word_pos.reshape(-1)

    kernel = functools.partial(
        _gather_add_kernel, seq_tile=TS, nbuf=NBUF, batch=B, seq_len=S,
        only_position=only_position)

    # ---------- Kernel 2: HBM word gather + VMEM pos lookup + add ----------
    out_pad = pl.pallas_call(
        kernel,
        out_shape=jax.ShapeDtypeStruct((S, B, D_pad), jnp.float32),
        grid_spec=pltpu.PrefetchScalarGridSpec(
            num_scalar_prefetch=2,                      # word ids, position ids -> SMEM
            grid=(S // TS,),
            in_specs=[pl.BlockSpec(memory_space=pl.ANY),                    # word table stays in HBM
                      pl.BlockSpec((P, D_pad), lambda st, wid, pid: (0, 0))],  # pos table VMEM-resident
            out_specs=pl.BlockSpec((TS, B, D_pad), lambda st, wid, pid: (st, 0, 0)),
            scratch_shapes=[pltpu.VMEM((NBUF, B, D_pad), jnp.float32),      # word-row pipeline
                            pltpu.SemaphoreType.DMA((NBUF, B))]),
        compiler_params=pltpu.CompilerParams(
            dimension_semantics=("parallel",),          # shards seq tiles across v7x TCs
            vmem_limit_bytes=vmem_limit),
    )(wid, pid, emb_w_pad, pos_w_pad)

    # Drop lane padding (no-op when D is already a multiple of 128).
    out_emb = out_pad[:, :, :emb_dim] if emb_dim != D_pad else out_pad
    return out_emb, mask


# ------------------------------ reference ----------------------------------

def _reference(x, emb_weight, pos_weight, only_position=False):
    x = np.asarray(x)
    emb_w = np.asarray(emb_weight)
    pos_w = np.asarray(pos_weight)
    B, S = x.shape
    mask = (x != 0).astype(np.float32)
    word_pos = np.zeros((B, S), dtype=np.int64)
    for b in range(B):
        idx = 1
        for s in range(S):
            if x[b, s] != 0:
                word_pos[b, s] = idx
                idx += 1
    pos_emb = pos_w[word_pos]                       # (B, S, D)
    out = pos_emb if only_position else emb_w[x] + pos_emb
    return out.transpose(1, 0, 2), mask


if __name__ == "__main__":
    B, S, D, V = 2, 8, 32, 50                       # small synthetic vocab / dims

    key = jax.random.PRNGKey(0)
    k_w, k_x = jax.random.split(key)

    # Deterministic "GloVe" weights (synthetic; no .pt/.h5 load) + sinusoid table.
    emb_weight = jax.random.normal(k_w, (V, D), dtype=jnp.float32)
    pos_weight = position_encoding_init(MAX_LEN + 1, D)

    x = jax.random.randint(k_x, (B, S), 0, V).astype(jnp.int32)
    x = x.at[0, 5:].set(0)                          # some padding positions
    x = x.at[1, 3].set(0)

    # Init-time table padding (done once, outside the forward path).
    emb_w_pad, pos_w_pad, emb_dim = prepare_embedding_tables(emb_weight, pos_weight)

    out_emb, mask = glove_embedding_with_position(x, emb_w_pad, pos_w_pad, emb_dim,
                                                  only_position=False)
    jax.block_until_ready((out_emb, mask))

    ref_out, ref_mask = _reference(x, emb_weight, pos_weight, only_position=False)
    assert out_emb.shape == (S, B, D) and mask.shape == (B, S)
    np.testing.assert_allclose(np.asarray(out_emb), ref_out, rtol=1e-5, atol=1e-5)
    np.testing.assert_allclose(np.asarray(mask), ref_mask, rtol=0, atol=0)

    out_pos, _ = glove_embedding_with_position(x, emb_w_pad, pos_w_pad, emb_dim,
                                               only_position=True)
    jax.block_until_ready(out_pos)
    ref_pos, _ = _reference(x, emb_weight, pos_weight, only_position=True)
    np.testing.assert_allclose(np.asarray(out_pos), ref_pos, rtol=1e-5, atol=1e-5)

    print("KERNEL_OK")
</pallas_src>

<mosaic_0001>
module attributes {stable_mosaic.version = 11 : i64} {
  func.func @_mask_pos_kernel(%arg0: memref<2x8xi32, #tpu.memory_space<vmem>>, %arg1: memref<8x8xbf16, #tpu.memory_space<vmem>>, %arg2: memref<2x8xf32, #tpu.memory_space<vmem>>, %arg3: memref<2x8xi32, #tpu.memory_space<vmem>>) attributes {dimension_semantics = [], scalar_prefetch = 0 : i64, scratch_operands = 0 : i64, tpu.core_type = #tpu.core_type<tc>} {
    %c0 = arith.constant 0 : index
    %c0_0 = arith.constant 0 : index
    %0 = vector.load %arg0[%c0, %c0_0] : memref<2x8xi32, #tpu.memory_space<vmem>>, vector<2x8xi32>
    %c0_i32 = arith.constant 0 : i32
    %1 = vector.broadcast %c0_i32 : i32 to vector<2x8xi32>
    %2 = arith.cmpi ne, %0, %1 : vector<2x8xi32>
    %3 = arith.extui %2 : vector<2x8xi1> to vector<2x8xi32>
    %4 = arith.sitofp %3 : vector<2x8xi32> to vector<2x8xf32>
    %c0_1 = arith.constant 0 : index
    %c0_2 = arith.constant 0 : index
    %5 = vector.load %arg2[%c0_1, %c0_2] : memref<2x8xf32, #tpu.memory_space<vmem>>, vector<2x8xf32>
    tpu.vector_store %arg2[%c0_1, %c0_2], %4 {strides = array<i32>} : memref<2x8xf32, #tpu.memory_space<vmem>>, vector<2x8xf32>,
    %6 = arith.extui %2 : vector<2x8xi1> to vector<2x8xi32>
    %7 = arith.sitofp %6 : vector<2x8xi32> to vector<2x8xf32>
    %8 = arith.truncf %7 : vector<2x8xf32> to vector<2x8xbf16>
    %c0_3 = arith.constant 0 : index
    %c0_4 = arith.constant 0 : index
    %9 = vector.load %arg1[%c0_3, %c0_4] : memref<8x8xbf16, #tpu.memory_space<vmem>>, vector<8x8xbf16>
    %cst = arith.constant dense<0.000000e+00> : vector<2x8xf32>
    %10 = tpu.matmul %8, %9, %cst {dimension_numbers = #tpu.dot_dimension_numbers<[1], [0], [0], [1], [0, 0, 1, 1], [], []>} : vector<2x8xbf16>, vector<8x8xbf16>, vector<2x8xf32> -> vector<2x8xf32>
    %11 = arith.fptosi %10 : vector<2x8xf32> to vector<2x8xi32>
    %c0_i32_5 = arith.constant 0 : i32
    %12 = vector.broadcast %c0_i32_5 : i32 to vector<2x8xi32>
    %13 = arith.select %2, %11, %12 : vector<2x8xi1>, vector<2x8xi32>
    %c600_i32 = arith.constant 600 : i32
    %14 = vector.broadcast %c600_i32 : i32 to vector<2x8xi32>
    %15 = arith.minsi %13, %14 : vector<2x8xi32>
    %c0_6 = arith.constant 0 : index
    %c0_7 = arith.constant 0 : index
    %16 = vector.load %arg3[%c0_6, %c0_7] : memref<2x8xi32, #tpu.memory_space<vmem>>, vector<2x8xi32>
    tpu.vector_store %arg3[%c0_6, %c0_7], %15 {strides = array<i32>} : memref<2x8xi32, #tpu.memory_space<vmem>>, vector<2x8xi32>,
    return
  }
}

</mosaic_0001>

<bundles_post_ra>
// kernel: tpu_custom_call.1
= control target key start
LH: loop header
LB: loop body
LE: loop exit
PB: predicated region body
PF: predicated region fallthrough
CT: control target
= control target key end

     0   :  { %9 = vsyncpa [#allocation3], 0  ;;  %s323_s0 = inlined_call_operand.hbm [shape: s32[2,8], index: 0, kind: input, shape index: {}]   ;;  %s324_s1 = inlined_call_operand.hbm [shape: bf16[8,8], index: 1, kind: input, shape index: {}]   ;;  %s325_s2 = inlined_call_operand.hbm [shape: f32[2,8], index: 2, kind: output, shape index: {0}]   ;;  %s326_s3 = inlined_call_operand.hbm [shape: s32[2,8], index: 3, kind: output, shape index: {1}]  }
   0x1   :  { %10 = vsyncpa [#allocation6], 0 }
   0x2   :  { %11 = vsyncpa [#allocation4], 0 }
   0x3   :  { %12 = vsyncpa [#allocation9], 0  ;;  %s245_s12 = smov [#allocation2]   ;;  %s246_s14 = smov [#allocation5]  }
   0x4   :  { %s19_s13 = sshll.u32 %s245_s12, 4  ;;  %s29_s15 = sshll.u32 %s246_s14, 4  ;;  %s20_s13 = int_to_ptr.vmem [resolvable:$true] %s19_s13  ;;  %s30_s15 = int_to_ptr.vmem [resolvable:$true] %s29_s15 }
   0x5   :  { %s149_s18 = scalar_lea.hbm %s323_s0, 32 }
   0x6   :  { %p150_p0 = scmp.ne.s32.totalorder %s323_s0, %s149_s18  ;;  %p153_p1 = scmp.lt.u32.totalorder %s149_s18, %s323_s0 }
   0x8   :  { %p155_p2 = pnand %p153_p1, %p150_p0 }
   0xa   :  { %158 = shalt.err (!%p155_p2)
}
   0xb   :  { %s159_s23 = scalar_lea.vmem %s20_s13, 32  ;;  %p164_p4 = scmp.lt.s32.totalorder %s20_s13, %s20_s13 }
   0xc   :  { %p160_p3 = scmp.ne.s32.totalorder %s20_s13, %s159_s23  ;;  %p165_p5 = scmp.lt.s32.totalorder %s159_s23, %s159_s23 }
   0xe   :  { %p166_p6 = por %p165_p5, %p164_p4 }
  0x10   :  { %p167_p7 = pnand %p166_p6, %p160_p3 }
  0x12   :  { %170 = shalt.err (!%p167_p7)
}
  0x13   :  { %22 = dma.hbm_to_vmem [thread:$0]  %s323_s0, 32, %s20_s13, [#allocation3]  }
  0x14   :  { %s171_s28 = scalar_lea.hbm %s324_s1, 64 }
  0x15   :  { %p172_p8 = scmp.ne.s32.totalorder %s324_s1, %s171_s28  ;;  %p175_p9 = scmp.lt.u32.totalorder %s171_s28, %s324_s1 }
  0x17   :  { %p177_p10 = pnand %p175_p9, %p172_p8 }
  0x19   :  { %180 = shalt.err (!%p177_p10)
}
  0x1a   :  { %s181_s6 = scalar_lea.vmem %s30_s15, 64  ;;  %p186_p12 = scmp.lt.s32.totalorder %s30_s15, %s30_s15 }
  0x1b   :  { %p182_p11 = scmp.ne.s32.totalorder %s30_s15, %s181_s6  ;;  %p187_p13 = scmp.lt.s32.totalorder %s181_s6, %s181_s6 }
  0x1d   :  { %p188_p0 = por %p187_p13, %p186_p12 }
  0x1f   :  { %p189_p1 = pnand %p188_p0, %p182_p11 }
  0x21   :  { %192 = shalt.err (!%p189_p1)
}
  0x22   :  { %32 = dma.hbm_to_vmem [thread:$0]  %s324_s1, 64, %s30_s15, [#allocation6]  }
  0x23   :  { %237 = dma.done.wait [#allocation3], 32  }
  0x24   :  { %238 = vsyncadd [#allocation3], 4294967264 }
  0x25   :  { %239 = dma.done.wait [#allocation6], 64  }
  0x26   :  { %240 = vsyncadd [#allocation6], 4294967232  ;;  %v247_v0 = vmov 0.0   ;;  %vm248_vm0 = vmmov 0   ;;  %vm52_vm1 = vcmask 1043456   ;;  %vm48_vm3 = vcmask 64512  }
  0x27   :  { %135 = vmatprep.subr.bf16.mxu0 %v247_v0  ;;  %137 = vmatprep.mubr.msk.bf16.mxu0 %vm248_vm0, %v247_v0  ;;  %v40_v1 = vld [vmem:[#allocation2] sm:$0x3]  ;;  %v47_v2 = vld [vmem:[#allocation5] sm:$0xf]  ;;  %vm44_vm4 = vcmask 58368   ;;  %s249_s1 = smov [#allocation7]  }
  0x28   :  { %vm41_vm2 = vcmp.ne.s32.totalorder %v40_v1, 0  ;;  %v54_v3 = vsel %vm52_vm1, %v47_v2, 0  ;;  %s107_s8 = sshll.u32 %s249_s1, 4  ;;  %s108_s8 = int_to_ptr.vmem [resolvable:$true] %s107_s8 }
  0x29   :  { %v131_v4 = vsel %vm41_vm2, 1.0, %v247_v0  ;;  %136 = vmatpush3.bf16.msra.mxu0 %v54_v3  ;;  %s193_s9 = scalar_lea.vmem %s108_s8, 32  ;;  %p198_p3 = scmp.lt.s32.totalorder %s108_s8, %s108_s8 }
  0x2a   :  { %v46_v5 = vpack.c.bf16 %v131_v4, %v131_v4  ;;  %45 = vst.msk [vmem:[#allocation7] sm:$0x3] %vm44_vm4, %v131_v4  ;;  %p194_p2 = scmp.ne.s32.totalorder %s108_s8, %s193_s9  ;;  %p199_p4 = scmp.lt.s32.totalorder %s193_s9, %s193_s9 }
  0x2c   :  { %138 = vmatmul.mubr.msk.bf16.vlgmr.msra.gmra.mrb[0].mxu0 %vm48_vm3, %v46_v5  ;;  %p200_p5 = por %p199_p4, %p198_p3 }
  0x2e   :  { %p201_p6 = pnand %p200_p5, %p194_p2 }
  0x30   :  { %204 = shalt.err (!%p201_p6)
}
  0x31   :  { %s205_s12 = scalar_lea.hbm %s325_s2, 32 }
  0x32   :  { %p206_p7 = scmp.ne.s32.totalorder %s325_s2, %s205_s12  ;;  %p209_p8 = scmp.lt.u32.totalorder %s205_s12, %s325_s2 }
  0x34   :  { %p211_p9 = pnand %p209_p8, %p206_p7 }
  0x36   :  { %214 = shalt.err (!%p211_p9)
}
  0x37   :  { %110 = dma.vmem_to_hbm [thread:$0]  %s108_s8, 32, %s325_s2, [#allocation4]  }
  0x38   :  { %s250_s19 = smov [#allocation8]  }
  0x39   :  { %s117_s20 = sshll.u32 %s250_s19, 4  ;;  %s118_s20 = int_to_ptr.vmem [resolvable:$true] %s117_s20 }
  0x3a   :  { %s215_s21 = scalar_lea.vmem %s118_s20, 32  ;;  %p220_p11 = scmp.lt.s32.totalorder %s118_s20, %s118_s20 }
  0x3b   :  { %p216_p10 = scmp.ne.s32.totalorder %s118_s20, %s215_s21  ;;  %p221_p12 = scmp.lt.s32.totalorder %s215_s21, %s215_s21 }
  0x3d   :  { %p222_p13 = por %p221_p12, %p220_p11 }
  0x3f   :  { %p223_p0 = pnand %p222_p13, %p216_p10 }
  0xff   :  { %v90_v6 = vpop.f32.mrb[0].mxu0 }
 0x100   :  { %v141_v7 = vtrunc.f32 %v90_v6  ;;  %v139_v8 = vpop.f32.mrb[1].mxu0 }
 0x101   :  { %v93_v9 = vpop.f32.mrb[2].mxu0 }
 0x102   :  { %v142_v10 = vcvt.f32.s32 %v141_v7  ;;  %v140_v11 = vpop.f32.mrb[3].mxu0 }
 0x104   :  { %v97_v12 = vsel %vm41_vm2, %v142_v10, 0 }
 0x105   :  { %vm98_vm5 = vcmp.lt.s32.totalorder %v97_v12, 600 }
 0x106   :  { %v99_v13 = vsel %vm98_vm5, %v97_v12, 600 }
 0x107   :  { %100 = vst.msk [vmem:[#allocation8] sm:$0x3] %vm44_vm4, %v99_v13 }
 0x108   :  { %226 = shalt.err (!%p223_p0)
}
 0x109   :  { %s227_s23 = scalar_lea.hbm %s326_s3, 32 }
 0x10a   :  { %p228_p1 = scmp.ne.s32.totalorder %s326_s3, %s227_s23  ;;  %p231_p2 = scmp.lt.u32.totalorder %s227_s23, %s326_s3 }
 0x10c   :  { %p233_p3 = pnand %p231_p2, %p228_p1 }
 0x10e   :  { %236 = shalt.err (!%p233_p3)
}
 0x10f   :  { %120 = dma.vmem_to_hbm [thread:$0]  %s118_s20, 32, %s326_s3, [#allocation9]  }
 0x110   :  { %241 = dma.done.wait [#allocation4], 32  }
 0x111   :  { %242 = vsyncadd [#allocation4], 4294967264 }
 0x112   :  { %243 = dma.done.wait [#allocation9], 32  }
 0x113   :  { %244 = vsyncadd [#allocation9], 4294967264 }
 0x114   :  { %127 = vsyncpa [#allocation3], 1 }
 0x115   :  { %128 = vsyncpa [#allocation6], 1 }
 0x116   :  { %129 = vsyncpa [#allocation4], 1 }
 0x117   :  { %130 = vsyncpa [#allocation9], 1 }

</bundles_post_ra>
